<compile_context>
chip_gen: v7x
topology: tpu7x:2x2x1
jax: 0.10.0
libtpu: 0.0.40
codegen_flags: <defaults>
</compile_context>

<pallas_src>
import functools

import jax
import jax.numpy as jnp
from jax import lax
from jax.experimental import pallas as pl
from jax.experimental.pallas import tpu as pltpu


def _logitnorm_loss_kernel(x_ref, tgt_ref, out_ref, *, inv_t, use_max_sub,
                           tile_n, n_valid, mask_rows):
    x = x_ref[...].astype(jnp.float32)                        # (tile_n, C)
    tgt = tgt_ref[...]                                        # (tile_n, 1) int32

    # ||x||_2 over classes (+1e-7) folded with 1/t into one per-row scale so the
    # only full-tile op on x besides exp is a multiply.
    ss = jnp.sum(x * x, axis=-1, keepdims=True)               # (tile_n, 1)
    scale = inv_t / (jnp.sqrt(ss) + 1e-7)                     # (tile_n, 1), > 0

    # Target logit picked from x (not z): z then has a single consumer (exp).
    cols = lax.broadcasted_iota(jnp.int32, x.shape, 1)
    x_tgt = jnp.sum(jnp.where(cols == tgt, x, 0.0), axis=-1, keepdims=True)
    z_tgt = x_tgt * scale                                     # (tile_n, 1)

    if use_max_sub:
        # scale > 0  =>  max(x * scale) = max(x) * scale; no second z pass.
        m = jnp.max(x, axis=-1, keepdims=True) * scale
        lse = m + jnp.log(jnp.sum(jnp.exp(x * scale - m), axis=-1, keepdims=True))
    else:
        # |z_i| <= 1/t <= 60 since ||x / (||x||+1e-7)||_2 <= 1: exp cannot overflow.
        lse = jnp.log(jnp.sum(jnp.exp(x * scale), axis=-1, keepdims=True))

    loss_rows = lse - z_tgt                                   # (tile_n, 1)

    if mask_rows:
        row = (pl.program_id(0) * tile_n
               + lax.broadcasted_iota(jnp.int32, loss_rows.shape, 0))
        loss_rows = jnp.where(row < n_valid, loss_rows, 0.0)

    partial = jnp.sum(loss_rows)
    # Lane-dense per-tile partial sum; the wrapper reads [:, 0, 0].
    out_ref[...] = jnp.full(out_ref.shape, partial, dtype=jnp.float32)


def _round_up(x, m):
    return (x + m - 1) // m * m


def _default_vmem_budget():
    """Working-set budget per grid step, derived from the generation's VMEM."""
    try:
        cap = pltpu.get_tpu_info().vmem_capacity_bytes
    except Exception:  # pragma: no cover - conservative fallback off-TPU
        cap = 64 << 20
    # v7x (64 MiB) -> 8 MiB budget; v5e/v6e (128 MiB) -> 12 MiB budget.
    return min(12 << 20, cap // 8)


def _pick_tile_n(n, c, in_itemsize, budget_bytes, min_tiles=2):
    """Pick tile_n (multiple of 8) whose *whole* VMEM working set fits the
    budget: double-buffered input tile plus ~4 tile-sized f32 temporaries
    (f32 upcast, exp argument, exp result, select/mask), and small enough that
    the grid has >= min_tiles steps (megacore sharding + pipelining)."""
    per_row = c * (2 * in_itemsize + 4 * 4)
    tile_n = max(8, (budget_bytes // per_row) // 8 * 8)
    n_pad8 = _round_up(n, 8)
    tile_n = min(tile_n, n_pad8)
    if n_pad8 > 8:
        max_for_tiles = max(8, (n_pad8 // min_tiles) // 8 * 8)
        tile_n = min(tile_n, max_for_tiles)
    return tile_n


def _x_block_spec(tile_n, c, deep_buffer):
    if deep_buffer:
        try:
            return pl.BlockSpec((tile_n, c), lambda i: (i, 0),
                                pipeline_mode=pl.Buffered(3))
        except (TypeError, AttributeError):
            pass
    return pl.BlockSpec((tile_n, c), lambda i: (i, 0))


def logitnorm_loss(x, target, t=1.0, tile_n=None, tile_vmem_budget=None):
    """x: (N, C) float logits (f32 or bf16), target: (N,) int labels.
    t must be a static Python float (it is baked into the kernel).
    Returns scalar mean cross-entropy of the temperature-normalized logits."""
    n, c = x.shape
    in_itemsize = jnp.dtype(x.dtype).itemsize

    if tile_vmem_budget is None:
        tile_vmem_budget = _default_vmem_budget()
    if tile_n is None:
        tile_n = _pick_tile_n(n, c, in_itemsize, tile_vmem_budget)
    assert tile_n % 8 == 0 or tile_n == n, tile_n  # (8,128) second-minor rule

    # Pad awkward batch sizes up to a multiple of tile_n; padded rows (zeros)
    # are masked out of the loss sum in-kernel.
    n_pad = _round_up(n, tile_n)
    tgt_i32 = target.astype(jnp.int32)
    if n_pad != n:
        x = jnp.pad(x, ((0, n_pad - n), (0, 0)))
        tgt_i32 = jnp.pad(tgt_i32, (0, n_pad - n))
    num_tiles = n_pad // tile_n
    tgt2d = tgt_i32.reshape(n_pad, 1)

    inv_t = 1.0 / float(t)
    use_max_sub = inv_t > 60.0  # only needed for very small temperatures

    kernel = functools.partial(
        _logitnorm_loss_kernel,
        inv_t=inv_t,
        use_max_sub=use_max_sub,
        tile_n=tile_n,
        n_valid=n,
        mask_rows=(n_pad != n),
    )

    cost = pl.CostEstimate(
        flops=6 * n_pad * c,
        transcendentals=n_pad * c,  # exp per logit dominates
        bytes_accessed=n_pad * c * in_itemsize + n_pad * 4 + num_tiles * 8 * 128 * 4,
    )

    x_tile_bytes = tile_n * c * in_itemsize
    deep_buffer = (x_tile_bytes < (2 << 20)) and (num_tiles >= 3)

    # Working set (per my per_row accounting) is <= ~12 MiB, so 32 MiB scoped
    # VMEM is safe on v5e/v6e and within v7x's 64 MiB physical capacity.
    partials = pl.pallas_call(
        kernel,
        out_shape=jax.ShapeDtypeStruct((num_tiles, 8, 128), jnp.float32),
        grid_spec=pltpu.PrefetchScalarGridSpec(
            num_scalar_prefetch=0,
            grid=(num_tiles,),
            in_specs=[
                _x_block_spec(tile_n, c, deep_buffer),
                pl.BlockSpec((tile_n, 1), lambda i: (i, 0)),
            ],
            out_specs=pl.BlockSpec((1, 8, 128), lambda i: (i, 0, 0)),
        ),
        compiler_params=pltpu.CompilerParams(
            dimension_semantics=("parallel",),   # per-tile outputs -> megacore OK
            vmem_limit_bytes=32 << 20,
        ),
        cost_estimate=cost,
    )(x, tgt2d)

    return partials[:, 0, 0].sum() / jnp.float32(n)


def _reference(x, target, t=1.0):
    x = x.astype(jnp.float32)
    norms = jnp.sqrt(jnp.sum(x * x, axis=-1, keepdims=True)) + 1e-7
    z = (x / norms) / t
    logp = jax.nn.log_softmax(z, axis=-1)
    nll = -jnp.take_along_axis(logp, target[:, None].astype(jnp.int32), axis=-1)
    return jnp.mean(nll)


if __name__ == "__main__":
    key = jax.random.PRNGKey(0)
    kx, kt = jax.random.split(key)

    # Small shapes consistent with the module: batch=8, classes=32.
    N, C = 8, 32
    x = jax.random.normal(kx, (N, C), dtype=jnp.float32)
    target = jax.random.randint(kt, (N,), 0, C, dtype=jnp.int32)

    loss = logitnorm_loss(x, target, t=1.0)
    jax.block_until_ready(loss)
    ref = _reference(x, target, t=1.0)
    assert jnp.allclose(loss, ref, atol=1e-5, rtol=1e-5), (loss, ref)

    # Non-multiple-of-8 batch (exercises padding + row masking + 2-tile grid)
    # and a very small temperature (exercises the max-subtraction path).
    N2 = 13
    x2 = jax.random.normal(kx, (N2, C), dtype=jnp.float32)
    target2 = jax.random.randint(kt, (N2,), 0, C, dtype=jnp.int32)
    loss2 = logitnorm_loss(x2, target2, t=0.01)
    jax.block_until_ready(loss2)
    ref2 = _reference(x2, target2, t=0.01)
    assert jnp.allclose(loss2, ref2, atol=1e-4, rtol=1e-4), (loss2, ref2)

    print("KERNEL_OK")
</pallas_src>

<mosaic_0001>
module attributes {stable_mosaic.version = 11 : i64} {
  func.func @_logitnorm_loss_kernel(%arg0: i32, %arg1: memref<8x32xf32, #tpu.memory_space<vmem>>, %arg2: memref<8x1xi32, #tpu.memory_space<vmem>>, %arg3: memref<1x8x128xf32, #tpu.memory_space<vmem>>) attributes {dimension_semantics = [#tpu.dimension_semantics<parallel>], iteration_bounds = array<i64: 1>, scalar_prefetch = 0 : i64, scratch_operands = 0 : i64, tpu.core_type = #tpu.core_type<tc>, window_params = [{transform_indices = @transform_0, window_bounds = array<i64: 8, 32>}, {transform_indices = @transform_1, window_bounds = array<i64: 8, 1>}, {transform_indices = @transform_2, window_bounds = array<i64: 1, 8, 128>}]} {
    %c0 = arith.constant 0 : index
    %c0_0 = arith.constant 0 : index
    %0 = vector.load %arg1[%c0, %c0_0] : memref<8x32xf32, #tpu.memory_space<vmem>>, vector<8x32xf32>
    %c0_1 = arith.constant 0 : index
    %c0_2 = arith.constant 0 : index
    %1 = vector.load %arg2[%c0_1, %c0_2] : memref<8x1xi32, #tpu.memory_space<vmem>>, vector<8x1xi32>
    %2 = arith.mulf %0, %0 : vector<8x32xf32>
    %cst = arith.constant dense<0.000000e+00> : vector<8xf32>
    %3 = vector.multi_reduction <add>, %2, %cst [1] : vector<8x32xf32> to vector<8xf32>
    %4 = vector.shape_cast %3 : vector<8xf32> to vector<8x1xf32>
    %5 = math.sqrt %4 : vector<8x1xf32>
    %cst_3 = arith.constant 1.000000e-07 : f32
    %6 = vector.broadcast %cst_3 : f32 to vector<8x1xf32>
    %7 = arith.addf %5, %6 : vector<8x1xf32>
    %cst_4 = arith.constant 1.000000e+00 : f32
    %8 = vector.broadcast %cst_4 : f32 to vector<8x1xf32>
    %9 = arith.divf %8, %7 : vector<8x1xf32>
    %10 = tpu.iota {dimensions = array<i32: 1>} : vector<8x32xi32>
    %11 = vector.broadcast %1 : vector<8x1xi32> to vector<8x32xi32>
    %12 = arith.cmpi eq, %10, %11 : vector<8x32xi32>
    %cst_5 = arith.constant 0.000000e+00 : f32
    %13 = vector.broadcast %cst_5 : f32 to vector<8x32xf32>
    %14 = arith.select %12, %0, %13 : vector<8x32xi1>, vector<8x32xf32>
    %cst_6 = arith.constant dense<0.000000e+00> : vector<8xf32>
    %15 = vector.multi_reduction <add>, %14, %cst_6 [1] : vector<8x32xf32> to vector<8xf32>
    %16 = vector.shape_cast %15 : vector<8xf32> to vector<8x1xf32>
    %17 = arith.mulf %16, %9 : vector<8x1xf32>
    %18 = vector.broadcast %9 : vector<8x1xf32> to vector<8x32xf32>
    %19 = arith.mulf %0, %18 : vector<8x32xf32>
    %20 = math.exp %19 : vector<8x32xf32>
    %cst_7 = arith.constant dense<0.000000e+00> : vector<8xf32>
    %21 = vector.multi_reduction <add>, %20, %cst_7 [1] : vector<8x32xf32> to vector<8xf32>
    %22 = vector.shape_cast %21 : vector<8xf32> to vector<8x1xf32>
    %23 = math.log %22 : vector<8x1xf32>
    %24 = arith.subf %23, %17 : vector<8x1xf32>
    %25 = vector.shape_cast %24 : vector<8x1xf32> to vector<1x8x1xf32>
    %cst_8 = arith.constant dense<0.000000e+00> : vector<1xf32>
    %26 = vector.multi_reduction <add>, %25, %cst_8 [1, 2] : vector<1x8x1xf32> to vector<1xf32>
    %27 = vector.shape_cast %26 : vector<1xf32> to vector<1x1x1xf32>
    %28 = vector.extract %27[0, 0, 0] : f32 from vector<1x1x1xf32>
    %29 = vector.broadcast %28 : f32 to vector<1x8x128xf32>
    %c0_9 = arith.constant 0 : index
    %c0_10 = arith.constant 0 : index
    %c0_11 = arith.constant 0 : index
    %30 = vector.load %arg3[%c0_9, %c0_10, %c0_11] : memref<1x8x128xf32, #tpu.memory_space<vmem>>, vector<1x8x128xf32>
    tpu.vector_store %arg3[%c0_9, %c0_10, %c0_11], %29 {strides = array<i32>} : memref<1x8x128xf32, #tpu.memory_space<vmem>>, vector<1x8x128xf32>,
    return
  }
  func.func @transform_0(%arg0: i32) -> (i32, i32) {
    %c0_i32 = arith.constant 0 : i32
    %c0_i32_0 = arith.constant 0 : i32
    return %arg0, %c0_i32 : i32, i32
  }
  func.func @transform_1(%arg0: i32) -> (i32, i32) {
    %c0_i32 = arith.constant 0 : i32
    %c0_i32_0 = arith.constant 0 : i32
    return %arg0, %c0_i32 : i32, i32
  }
  func.func @transform_2(%arg0: i32) -> (i32, i32, i32) {
    %c0_i32 = arith.constant 0 : i32
    %c0_i32_0 = arith.constant 0 : i32
    %c0_i32_1 = arith.constant 0 : i32
    return %arg0, %c0_i32, %c0_i32_0 : i32, i32, i32
  }
}

</mosaic_0001>

<bundles_post_ra>
// kernel: tpu_custom_call.1
= control target key start
LH: loop header
LB: loop body
LE: loop exit
PB: predicated region body
PF: predicated region fallthrough
CT: control target
= control target key end

     0   :  { %vm15_vm0 = vcmask 261120   ;;  %s151_s0 = inlined_call_operand.vmem [shape: f32[8,32], index: 0, kind: input, shape index: {}]   ;;  %s152_s1 = inlined_call_operand.vmem [shape: s32[8,1], index: 1, kind: input, shape index: {}]   ;;  %s153_s2 = inlined_call_operand.hbm [shape: f32[1,8,128], index: 2, kind: output, shape index: {}]  }
   0x1   :  { %v12_v0 = vld [vmem:[%s151_s0] sm:$0xff] }
   0x2   :  { %7 = vsyncpa [#allocation3], 0  ;;  %v14_v1 = vmul.f32 %v12_v0, %v12_v0  ;;  %v113_v2 = vmov 0   ;;  %v13_v4 = vld [vmem:[%s152_s1] sm:$0xff]  ;;  %v29_v15 = vlaneseq  ;;  %vm49_vm4 = vcmask 7168   ;;  %s114_s0 = smov [#allocation2]  }
   0x3   :  { %80 = vset.pattern.permute.xlu0 %v113_v2  ;;  %s68_s1 = sshll.u32 %s114_s0, 4  ;;  %s69_s1 = int_to_ptr.vmem [resolvable:$true] %s68_s1 }
   0x4   :  { %v16_v3 = vsel %vm15_vm0, %v14_v1, 0.0  ;;  %v30_v16 = vand.u32 127, %v29_v15  ;;  %s89_s14 = scalar_lea.vmem %s69_s1, 128  ;;  %p94_p1 = scmp.lt.s32.totalorder %s69_s1, %s69_s1 }
   0x5   :  { %17 = vadd.xlane.f32.xlu0 %v16_v3  ;;  %p90_p0 = scmp.ne.s32.totalorder %s69_s1, %s89_s14  ;;  %p95_p2 = scmp.lt.s32.totalorder %s89_s14, %s89_s14 }
   0x7   :  { %p96_p3 = por %p95_p2, %p94_p1 }
   0x9   :  { %p97_p4 = pnand %p96_p3, %p90_p0 }
  0x1b   :  { %32 = vperm.xlu0 %80, %v13_v4  }
  0x92   :  { %v18_v5 = vpop.xlane.xlu0 %17 }
  0x93   :  { %81 = vrsqrt.f32 %v18_v5  ;;  %vm21_vm1 = vcmp.eq.f32.partialorder %v18_v5, inf  ;;  %v24_v8 = vand.u32 2147483648, %v18_v5  ;;  %vm23_vm2 = vcmp.eq.f32.partialorder %v18_v5, 0.0 }
  0x9a   :  { %v33_v17 = vpop.permute.xlu0 %32 }
  0x9b   :  { %vm34_vm3 = vcmp.eq.s32.totalorder %v30_v16, %v33_v17 }
  0x9c   :  { %v35_v19 = vsel %vm34_vm3, %v12_v0, 0.0 }
  0x9d   :  { %v82_v6 = vpop.eup %81  ;;  %v36_v21 = vsel %vm15_vm0, %v35_v19, 0.0 }
  0x9e   :  { %v20_v7 = vmul.f32 %v82_v6, %v18_v5 }
  0xa0   :  { %v22_v9 = vsel %vm21_vm1, %v18_v5, %v20_v7 }
  0xa1   :  { %v25_v10 = vsel %vm23_vm2, %v24_v8, %v22_v9 }
  0xa2   :  { %v26_v11 = vadd.f32 1e-07, %v25_v10 }
  0xa4   :  { %83 = vrcp.f32 %v26_v11 }
  0xae   :  { %v84_v12 = vpop.eup %83 }
  0xaf   :  { %v40_v13 = vmul.f32 %v84_v12, %v12_v0 }
  0xb1   :  { %v41_v14 = vmul.f32 1.442695, %v40_v13 }
  0xb3   :  { %85 = vpow2.f32 %v41_v14 }
  0xbd   :  { %v86_v18 = vpop.eup %85 }
  0xbe   :  { %v43_v20 = vsel %vm15_vm0, %v86_v18, 0.0 }
  0xbf   :  { %44 = vadd.xlane.f32.xlu1 %v43_v20 }
  0xc3   :  { %37 = vadd.xlane.f32.xlu1 %v36_v21 }
 0x14c   :  { %v45_v22 = vpop.xlane.xlu1 %44 }
 0x14d   :  { %87 = vlog2.f32 %v45_v22 }
 0x150   :  { %v38_v23 = vpop.xlane.xlu1 %37 }
 0x151   :  { %v39_v26 = vmul.f32 %v84_v12, %v38_v23 }
 0x157   :  { %v88_v24 = vpop.eup %87 }
 0x158   :  { %v47_v25 = vmul.f32 0.6931472, %v88_v24 }
 0x15a   :  { %v48_v27 = vsub.f32 %v47_v25, %v39_v26 }
 0x15c   :  { %v50_v28 = vsel %vm49_vm4, %v48_v27, 0.0 }
 0x15d   :  { %51 = vadd.xlane.f32.xlu1 %v50_v28 }
 0x1ea   :  { %v52_v29 = vpop.xlane.xlu1 %51 }
 0x1eb   :  { %v53_v30 = vrot.slane %v52_v29, 4 }
 0x1ed   :  { %v54_v31 = vadd.f32 %v53_v30, %v52_v29 }
 0x1ef   :  { %v55_v32 = vrot.slane %v54_v31, 2 }
 0x1f1   :  { %v56_v33 = vadd.f32 %v55_v32, %v54_v31 }
 0x1f3   :  { %v57_v34 = vrot.slane %v56_v33, 1 }
 0x1f5   :  { %v58_v35 = vadd.f32 %v57_v34, %v56_v33 }
 0x1f7   :  { %76 = vpush %v58_v35 }
 0x228   :  { %s77_s13 = spop %76 }
 0x229   :  { %v60_v36 = vstv %s77_s13 }
 0x22a   :  { %61 = vst [vmem:[#allocation2] sm:$0xff] %v60_v36 }
 0x22b   :  { %100 = shalt.err (!%p97_p4)
}
 0x22c   :  { %s101_s17 = scalar_lea.hbm %s153_s2, 128 }
 0x22d   :  { %p102_p5 = scmp.ne.s32.totalorder %s153_s2, %s101_s17  ;;  %p105_p6 = scmp.lt.u32.totalorder %s101_s17, %s153_s2 }
 0x22f   :  { %p107_p7 = pnand %p105_p6, %p102_p5 }
 0x231   :  { %110 = shalt.err (!%p107_p7)
}
 0x232   :  { %71 = dma.vmem_to_hbm [thread:$0]  %s69_s1, 128, %s153_s2, [#allocation3]  }
 0x233   :  { %111 = dma.done.wait [#allocation3], 128  }
 0x234   :  { %112 = vsyncadd [#allocation3], 4294967168 }
 0x235   :  { %75 = vsyncpa [#allocation3], 1 }

</bundles_post_ra>
